<compile_context>
chip_gen: v5e
topology: v5e:2x2
jax: 0.10.0
libtpu: 0.0.40
codegen_flags: <defaults>
</compile_context>

<pallas_src>
from typing import NamedTuple

import numpy as np

import jax
import jax.numpy as jnp
from jax import lax
from jax.experimental import pallas as pl
from jax.experimental.pallas import tpu as pltpu


def _round_up(n, m):
    return ((n + m - 1) // m) * m


def _cdiv(a, b):
    return (a + b - 1) // b


def _device_kind():
    try:
        return jax.devices()[0].device_kind.lower()
    except Exception:  # pragma: no cover - defensive
        return ""


def _resident_spec(shape):
    """BlockSpec for an operand whose block never changes across the grid.

    Single-buffered (pl.Buffered(1)): the index_map is constant, so a second
    pipeline buffer would be pure VMEM waste.  Falls back to the default spec on
    older JAX without `pipeline_mode`.
    """
    index_map = lambda i: (0,) * len(shape)
    try:
        return pl.BlockSpec(shape, index_map, pipeline_mode=pl.Buffered(1))
    except (TypeError, AttributeError):
        return pl.BlockSpec(shape, index_map)


class LSTMPackConfig(NamedTuple):
    # Static (hashable) config produced by pack_params; pass as a static jit arg.
    input_dim: int
    hidden_dim: int
    output_dim: int
    d_pad: int
    out_pad: int
    compact: bool       # i|g|o packed contiguously into one 128-lane slab
    bf16_nonlin: bool   # run sigmoid/tanh in bf16 (v6e/v7x, small D)


def pack_params(params, *, bf16_nonlin=None):
    """One-time host-side packing of the PyTorch-layout LSTM+Linear parameters.

    Prunes the (mathematically dead) forget gate, folds b_ih + b_hh, transposes,
    zero-pads to lane-aligned slabs and casts the MXU operands to bf16.  Call once,
    outside jit; the returned dict of device arrays is what the forward consumes.
    """
    w_ih = np.asarray(params["w_ih"], np.float32)            # (4H, D), order i,f,g,o
    b_all = (np.asarray(params["b_ih"], np.float32)
             + np.asarray(params["b_hh"], np.float32))       # exact bias folding
    w_fc = np.asarray(params["w_fc"], np.float32)             # (O, H)
    b_fc = np.asarray(params["b_fc"], np.float32)              # (O,)
    # NOTE: params["w_hh"] is mathematically unused (seq_len == 1, zero initial state).

    four_h, d = w_ih.shape
    h = four_h // 4
    o = w_fc.shape[0]
    d_pad = _round_up(d, 128)
    out_pad = _round_up(o, 128)

    # Forget gate pruned: keep only i, g, o rows (PyTorch gate order i, f, g, o).
    gate_rows = (slice(0, h), slice(2 * h, 3 * h), slice(3 * h, 4 * h))

    compact = 3 * h <= 128
    if compact:
        # Contiguous columns [ i | g | o | 0-pad ] in one 128-lane slab.
        gate_cols = 128
        col0 = (0, h, 2 * h)
        h_row0 = 2 * h            # in-kernel h lives at lanes [2H, 3H)
        w_rows = gate_cols
    else:
        # Per-gate 128-lane-aligned padding (clean vreg slices in-kernel).
        hp = _round_up(h, 128)
        gate_cols = 3 * hp
        col0 = (0, hp, 2 * hp)
        h_row0 = 0                # in-kernel h lives at lanes [0, H)
        w_rows = hp

    wih = np.zeros((d_pad, gate_cols), np.float32)
    bias = np.zeros((1, gate_cols), np.float32)
    for c0, rows in zip(col0, gate_rows):
        wih[:d, c0:c0 + h] = w_ih[rows].T
        bias[0, c0:c0 + h] = b_all[rows]

    wfc = np.zeros((w_rows, out_pad), np.float32)
    wfc[h_row0:h_row0 + h, :o] = w_fc.T
    bfc = np.zeros((1, out_pad), np.float32)
    bfc[0, :o] = b_fc

    if bf16_nonlin is None:
        kind = _device_kind()
        # bf16 EUP exists on v6e/v7x; keep f32 on v5e (and unknown chips) for safety.
        bf16_nonlin = bool(kind) and ("v5" not in kind) and (d_pad <= 384)

    packed = {
        "wih": jnp.asarray(wih, jnp.bfloat16),     # bf16 MXU operand
        "bias": jnp.asarray(bias, jnp.float32),     # added post-matmul in f32
        "wfc": jnp.asarray(wfc, jnp.bfloat16),
        "bfc": jnp.asarray(bfc, jnp.float32),
    }
    cfg = LSTMPackConfig(d, h, o, d_pad, out_pad, compact, bool(bf16_nonlin))
    return packed, cfg


def _make_kernel(h, gate_cols, compact, bf16_nonlin):
    nl_dtype = jnp.bfloat16 if bf16_nonlin else jnp.float32

    def kernel(x_ref, wih_ref, bias_ref, wfc_ref, bfc_ref, out_ref):
        # x:    (TB, Dp)        bf16
        # wih:  (Dp, gate_cols) bf16   (padding columns are 0)
        # bias: (1, gate_cols)  f32    (b_ih + b_hh, forget gate pruned, 0-padded)
        # wfc:  (Wr, Op)        bf16   (only rows holding h are nonzero)
        # bfc:  (1, Op)         f32
        # out:  (TB, Op)        f32    (lane-dense padded output)
        gates = jnp.dot(x_ref[...], wih_ref[...],
                        preferred_element_type=jnp.float32)
        gates = gates + bias_ref[...]
        gn = gates.astype(nl_dtype)     # bf16 EUP on v6e/v7x when D small (EUP-bound)

        if compact:
            # Columns: [ i | g | o | 0 ] each H wide, contiguous (see pack_params).
            gp = gate_cols
            sig = jax.nn.sigmoid(gn).astype(jnp.float32)   # [s(i)|s(g)|s(o)|0.5]
            th = jnp.tanh(gn).astype(jnp.float32)          # [t(i)|t(g)|t(o)|0 ]
            rows = lax.broadcasted_iota(jnp.int32, (gp, gp), 0)
            cols = lax.broadcasted_iota(jnp.int32, (gp, gp), 1)
            # 0/1 permutation matrices (exact in bf16); realignment on the MXU is
            # direction-unambiguous, unlike a raw lane rotate.
            p_ig = jnp.where(((rows - cols) == h) & (cols < h),
                             1.0, 0.0).astype(jnp.bfloat16)      # lanes [H,2H)->[0,H)
            p_co = jnp.where(((cols - rows) == 2 * h) & (rows < h),
                             1.0, 0.0).astype(jnp.bfloat16)      # lanes [0,H)->[2H,3H)
            th_g = jnp.dot(th.astype(jnp.bfloat16), p_ig,
                           preferred_element_type=jnp.float32)   # [t(g)| 0 | 0 |0]
            c = sig * th_g                                       # [ c  | 0 | 0 |0]
            tc = jnp.tanh(c.astype(nl_dtype)).astype(jnp.float32)
            tc_o = jnp.dot(tc.astype(jnp.bfloat16), p_co,
                           preferred_element_type=jnp.float32)   # [ 0 | 0 |t(c)|0]
            hvec = sig * tc_o                                    # [ 0 | 0 | h  |0]
        else:
            hp = gate_cols // 3                 # per-gate 128-lane-aligned width
            i_g = jax.nn.sigmoid(gn[:, 0 * hp:1 * hp]).astype(jnp.float32)
            g_g = jnp.tanh(gn[:, 1 * hp:2 * hp]).astype(jnp.float32)
            o_g = jax.nn.sigmoid(gn[:, 2 * hp:3 * hp]).astype(jnp.float32)
            c = i_g * g_g                       # f * c0 == 0 (forget gate pruned)
            hvec = o_g * jnp.tanh(c.astype(nl_dtype)).astype(jnp.float32)

        out = jnp.dot(hvec.astype(jnp.bfloat16), wfc_ref[...],
                      preferred_element_type=jnp.float32)
        out_ref[...] = out + bfc_ref[...]

    return kernel


def lstm_classifier_forward(x, packed, cfg, *, tb_max=512):
    """x: (B, D) float32; packed/cfg from pack_params.  Returns (B, O) float32."""
    b, d = x.shape
    if d != cfg.input_dim:
        raise ValueError(f"input_dim mismatch: {d} vs packed {cfg.input_dim}")
    d_pad, out_pad = cfg.d_pad, cfg.out_pad
    gate_cols = packed["wih"].shape[1]
    w_rows = packed["wfc"].shape[0]

    # ---- Batch tiling: TB multiple of 16 (bf16 (16,128) vreg tile), minimal padding.
    n_tiles = max(1, _cdiv(b, tb_max))
    tb = _round_up(_cdiv(b, n_tiles), 16)
    b_pad = _round_up(b, tb)
    grid = (b_pad // tb,)

    # ---- Cast x to bf16 first (halves pad traffic), pad only if needed.
    x_b = x.astype(jnp.bfloat16)
    if (b_pad, d_pad) != (b, d):
        x_b = jnp.pad(x_b, ((0, b_pad - b), (0, d_pad - d)))

    kind = _device_kind()
    is_v7 = ("v7" in kind) or ("tpu7" in kind)
    # CORE_PARALLEL actually shards batch tiles across v7x's 2 TensorCores;
    # plain PARALLEL elsewhere (and for a single tile).
    if is_v7 and grid[0] >= 2:
        dims = (pltpu.CORE_PARALLEL,)
    else:
        dims = (pltpu.PARALLEL,)

    # ---- Explicit VMEM budget: single-buffered weights + double-buffered x/out tiles.
    weight_bytes = sum(int(a.size) * a.dtype.itemsize for a in packed.values())
    stream_bytes = 2 * (tb * d_pad * 2 + tb * out_pad * 4)
    vmem_cap = (60 << 20) if is_v7 else (100 << 20)    # stay below physical VMEM
    vmem_limit = int(min(vmem_cap,
                         max(32 << 20, 2 * weight_bytes + 2 * stream_bytes + (4 << 20))))

    # ---- Cost hint for XLA scheduling around the custom call.
    flops = 2 * b_pad * d_pad * gate_cols + 2 * b_pad * w_rows * out_pad
    if cfg.compact:
        flops += 2 * (2 * b_pad * gate_cols * gate_cols)      # permutation matmuls
        transcendentals = 3 * b_pad * gate_cols
    else:
        transcendentals = 4 * b_pad * (gate_cols // 3)
    bytes_accessed = b_pad * d_pad * 2 + weight_bytes + b_pad * out_pad * 4
    cost = pl.CostEstimate(flops=int(flops), transcendentals=int(transcendentals),
                           bytes_accessed=int(bytes_accessed))

    kernel = _make_kernel(cfg.hidden_dim, gate_cols, cfg.compact, cfg.bf16_nonlin)

    out_p = pl.pallas_call(
        kernel,
        out_shape=jax.ShapeDtypeStruct((b_pad, out_pad), jnp.float32),
        grid=grid,
        in_specs=[
            pl.BlockSpec((tb, d_pad), lambda i: (i, 0)),    # streamed x tile
            _resident_spec((d_pad, gate_cols)),             # W_ih slab (resident)
            _resident_spec((1, gate_cols)),                 # folded bias
            _resident_spec((w_rows, out_pad)),              # W_fc slab (resident)
            _resident_spec((1, out_pad)),                   # fc bias
        ],
        out_specs=pl.BlockSpec((tb, out_pad), lambda i: (i, 0)),   # lane-dense store
        compiler_params=pltpu.CompilerParams(
            dimension_semantics=dims, vmem_limit_bytes=vmem_limit),
        cost_estimate=cost,
    )(x_b, packed["wih"], packed["bias"], packed["wfc"], packed["bfc"])

    return out_p[:b, :cfg.output_dim]


def init_params(key, input_dim, hidden_dim, output_dim):
    # PyTorch default init: uniform(-1/sqrt(H), 1/sqrt(H)).
    k = jax.random.split(key, 6)
    s = 1.0 / jnp.sqrt(hidden_dim)
    return {
        "w_ih": jax.random.uniform(k[0], (4 * hidden_dim, input_dim),
                                   jnp.float32, -s, s),
        "w_hh": jax.random.uniform(k[1], (4 * hidden_dim, hidden_dim),
                                   jnp.float32, -s, s),
        "b_ih": jax.random.uniform(k[2], (4 * hidden_dim,),
                                   jnp.float32, -s, s),
        "b_hh": jax.random.uniform(k[3], (4 * hidden_dim,),
                                   jnp.float32, -s, s),
        "w_fc": jax.random.uniform(k[4], (output_dim, hidden_dim),
                                   jnp.float32, -s, s),
        "b_fc": jax.random.uniform(k[5], (output_dim,),
                                   jnp.float32, -s, s),
    }


def reference_forward(x, params):
    """Pure-JAX f32 reference mirroring PyTorch LSTM (seq_len=1, zero state) + Linear."""
    h = params["w_hh"].shape[1]
    gates = jnp.dot(x, params["w_ih"].T, precision=lax.Precision.HIGHEST)
    gates = gates + params["b_ih"] + params["b_hh"]
    i, g, o = gates[:, 0:h], gates[:, 2 * h:3 * h], gates[:, 3 * h:4 * h]
    c = jax.nn.sigmoid(i) * jnp.tanh(g)
    hid = jax.nn.sigmoid(o) * jnp.tanh(c)
    return jnp.dot(hid, params["w_fc"].T,
                   precision=lax.Precision.HIGHEST) + params["b_fc"]


if __name__ == "__main__":
    batch, input_dim, hidden_dim, output_dim = 2, 16, 32, 4

    key = jax.random.PRNGKey(0)
    k_x, k_p = jax.random.split(key)
    x = jax.random.normal(k_x, (batch, input_dim), jnp.float32)
    params = init_params(k_p, input_dim, hidden_dim, output_dim)

    # One-time weight packing (outside jit) -> per-call forward only touches x.
    packed, cfg = pack_params(params)
    fwd = jax.jit(lstm_classifier_forward, static_argnums=(2,))

    out = fwd(x, packed, cfg)
    out = jax.block_until_ready(out)

    ref = reference_forward(x, params)
    assert out.shape == (batch, output_dim)
    # Tolerance covers bf16 quantisation of x / W_ih / W_fc / h (and, on v6e/v7x,
    # bf16 gate nonlinearities); accumulation stays f32 and the math is otherwise exact.
    assert jnp.allclose(out, ref, atol=4e-2, rtol=4e-2), "mismatch vs reference"

    print("KERNEL_OK")
</pallas_src>

<mosaic_0001>
module attributes {stable_mosaic.version = 11 : i64} {
  func.func @kernel(%arg0: i32, %arg1: memref<16x128xbf16, #tpu.memory_space<vmem>>, %arg2: memref<128x128xbf16, #tpu.memory_space<vmem>>, %arg3: memref<1x128xf32, #tpu.memory_space<vmem>>, %arg4: memref<128x128xbf16, #tpu.memory_space<vmem>>, %arg5: memref<1x128xf32, #tpu.memory_space<vmem>>, %arg6: memref<16x128xf32, #tpu.memory_space<vmem>>) attributes {dimension_semantics = [#tpu.dimension_semantics<parallel>], iteration_bounds = array<i64: 1>, scalar_prefetch = 0 : i64, scratch_operands = 0 : i64, tpu.core_type = #tpu.core_type<tc>, window_params = [{transform_indices = @transform_0, window_bounds = array<i64: 16, 128>}, {pipeline_mode = #tpu.pipeline_mode<synchronous>, transform_indices = @transform_1, window_bounds = array<i64: 128, 128>}, {pipeline_mode = #tpu.pipeline_mode<synchronous>, transform_indices = @transform_2, window_bounds = array<i64: 1, 128>}, {pipeline_mode = #tpu.pipeline_mode<synchronous>, transform_indices = @transform_3, window_bounds = array<i64: 128, 128>}, {pipeline_mode = #tpu.pipeline_mode<synchronous>, transform_indices = @transform_4, window_bounds = array<i64: 1, 128>}, {transform_indices = @transform_5, window_bounds = array<i64: 16, 128>}]} {
    %c0 = arith.constant 0 : index
    %c0_0 = arith.constant 0 : index
    %0 = vector.load %arg1[%c0, %c0_0] : memref<16x128xbf16, #tpu.memory_space<vmem>>, vector<16x128xbf16>
    %c0_1 = arith.constant 0 : index
    %c0_2 = arith.constant 0 : index
    %1 = vector.load %arg2[%c0_1, %c0_2] : memref<128x128xbf16, #tpu.memory_space<vmem>>, vector<128x128xbf16>
    %cst = arith.constant dense<0.000000e+00> : vector<16x128xf32>
    %2 = tpu.matmul %0, %1, %cst {dimension_numbers = #tpu.dot_dimension_numbers<[1], [0], [0], [1], [0, 0, 1, 1], [], []>} : vector<16x128xbf16>, vector<128x128xbf16>, vector<16x128xf32> -> vector<16x128xf32>
    %c0_3 = arith.constant 0 : index
    %c0_4 = arith.constant 0 : index
    %3 = vector.load %arg3[%c0_3, %c0_4] : memref<1x128xf32, #tpu.memory_space<vmem>>, vector<1x128xf32>
    %4 = vector.broadcast %3 : vector<1x128xf32> to vector<16x128xf32>
    %5 = arith.addf %2, %4 : vector<16x128xf32>
    %6 = arith.truncf %5 : vector<16x128xf32> to vector<16x128xbf16>
    %7 = arith.negf %6 : vector<16x128xbf16>
    %8 = math.exp %7 : vector<16x128xbf16>
    %cst_5 = arith.constant 1.000000e+00 : bf16
    %9 = vector.broadcast %cst_5 : bf16 to vector<16x128xbf16>
    %10 = arith.addf %9, %8 : vector<16x128xbf16>
    %11 = arith.divf %9, %10 : vector<16x128xbf16>
    %12 = arith.extf %11 : vector<16x128xbf16> to vector<16x128xf32>
    %13 = math.tanh %6 : vector<16x128xbf16>
    %14 = arith.extf %13 : vector<16x128xbf16> to vector<16x128xf32>
    %15 = tpu.iota {dimensions = array<i32: 0>} : vector<128x128xi32>
    %16 = tpu.iota {dimensions = array<i32: 1>} : vector<128x128xi32>
    %17 = arith.subi %15, %16 : vector<128x128xi32>
    %c32_i32 = arith.constant 32 : i32
    %18 = vector.broadcast %c32_i32 : i32 to vector<128x128xi32>
    %19 = arith.cmpi eq, %17, %18 : vector<128x128xi32>
    %c32_i32_6 = arith.constant 32 : i32
    %20 = vector.broadcast %c32_i32_6 : i32 to vector<128x128xi32>
    %21 = arith.cmpi slt, %16, %20 : vector<128x128xi32>
    %22 = arith.andi %19, %21 : vector<128x128xi1>
    %cst_7 = arith.constant 1.000000e+00 : f32
    %cst_8 = arith.constant 0.000000e+00 : f32
    %23 = vector.broadcast %cst_7 : f32 to vector<128x128xf32>
    %24 = vector.broadcast %cst_8 : f32 to vector<128x128xf32>
    %25 = arith.select %22, %23, %24 : vector<128x128xi1>, vector<128x128xf32>
    %26 = arith.truncf %25 : vector<128x128xf32> to vector<128x128xbf16>
    %27 = arith.subi %16, %15 : vector<128x128xi32>
    %c64_i32 = arith.constant 64 : i32
    %28 = vector.broadcast %c64_i32 : i32 to vector<128x128xi32>
    %29 = arith.cmpi eq, %27, %28 : vector<128x128xi32>
    %c32_i32_9 = arith.constant 32 : i32
    %30 = vector.broadcast %c32_i32_9 : i32 to vector<128x128xi32>
    %31 = arith.cmpi slt, %15, %30 : vector<128x128xi32>
    %32 = arith.andi %29, %31 : vector<128x128xi1>
    %cst_10 = arith.constant 1.000000e+00 : f32
    %cst_11 = arith.constant 0.000000e+00 : f32
    %33 = vector.broadcast %cst_10 : f32 to vector<128x128xf32>
    %34 = vector.broadcast %cst_11 : f32 to vector<128x128xf32>
    %35 = arith.select %32, %33, %34 : vector<128x128xi1>, vector<128x128xf32>
    %36 = arith.truncf %35 : vector<128x128xf32> to vector<128x128xbf16>
    %37 = arith.truncf %14 : vector<16x128xf32> to vector<16x128xbf16>
    %cst_12 = arith.constant dense<0.000000e+00> : vector<16x128xf32>
    %38 = tpu.matmul %37, %26, %cst_12 {dimension_numbers = #tpu.dot_dimension_numbers<[1], [0], [0], [1], [0, 0, 1, 1], [], []>} : vector<16x128xbf16>, vector<128x128xbf16>, vector<16x128xf32> -> vector<16x128xf32>
    %39 = arith.mulf %12, %38 : vector<16x128xf32>
    %40 = arith.truncf %39 : vector<16x128xf32> to vector<16x128xbf16>
    %41 = math.tanh %40 : vector<16x128xbf16>
    %42 = arith.extf %41 : vector<16x128xbf16> to vector<16x128xf32>
    %43 = arith.truncf %42 : vector<16x128xf32> to vector<16x128xbf16>
    %cst_13 = arith.constant dense<0.000000e+00> : vector<16x128xf32>
    %44 = tpu.matmul %43, %36, %cst_13 {dimension_numbers = #tpu.dot_dimension_numbers<[1], [0], [0], [1], [0, 0, 1, 1], [], []>} : vector<16x128xbf16>, vector<128x128xbf16>, vector<16x128xf32> -> vector<16x128xf32>
    %45 = arith.mulf %12, %44 : vector<16x128xf32>
    %46 = arith.truncf %45 : vector<16x128xf32> to vector<16x128xbf16>
    %c0_14 = arith.constant 0 : index
    %c0_15 = arith.constant 0 : index
    %47 = vector.load %arg4[%c0_14, %c0_15] : memref<128x128xbf16, #tpu.memory_space<vmem>>, vector<128x128xbf16>
    %cst_16 = arith.constant dense<0.000000e+00> : vector<16x128xf32>
    %48 = tpu.matmul %46, %47, %cst_16 {dimension_numbers = #tpu.dot_dimension_numbers<[1], [0], [0], [1], [0, 0, 1, 1], [], []>} : vector<16x128xbf16>, vector<128x128xbf16>, vector<16x128xf32> -> vector<16x128xf32>
    %c0_17 = arith.constant 0 : index
    %c0_18 = arith.constant 0 : index
    %49 = vector.load %arg5[%c0_17, %c0_18] : memref<1x128xf32, #tpu.memory_space<vmem>>, vector<1x128xf32>
    %50 = vector.broadcast %49 : vector<1x128xf32> to vector<16x128xf32>
    %51 = arith.addf %48, %50 : vector<16x128xf32>
    %c0_19 = arith.constant 0 : index
    %c0_20 = arith.constant 0 : index
    %52 = vector.load %arg6[%c0_19, %c0_20] : memref<16x128xf32, #tpu.memory_space<vmem>>, vector<16x128xf32>
    tpu.vector_store %arg6[%c0_19, %c0_20], %51 {strides = array<i32>} : memref<16x128xf32, #tpu.memory_space<vmem>>, vector<16x128xf32>,
    return
  }
  func.func @transform_0(%arg0: i32) -> (i32, i32) {
    %c0_i32 = arith.constant 0 : i32
    %c0_i32_0 = arith.constant 0 : i32
    return %arg0, %c0_i32 : i32, i32
  }
  func.func @transform_1(%arg0: i32) -> (i32, i32) {
    %c0_i32 = arith.constant 0 : i32
    %c0_i32_0 = arith.constant 0 : i32
    %c0_i32_1 = arith.constant 0 : i32
    return %c0_i32, %c0_i32_0 : i32, i32
  }
  func.func @transform_2(%arg0: i32) -> (i32, i32) {
    %c0_i32 = arith.constant 0 : i32
    %c0_i32_0 = arith.constant 0 : i32
    %c0_i32_1 = arith.constant 0 : i32
    return %c0_i32, %c0_i32_0 : i32, i32
  }
  func.func @transform_3(%arg0: i32) -> (i32, i32) {
    %c0_i32 = arith.constant 0 : i32
    %c0_i32_0 = arith.constant 0 : i32
    %c0_i32_1 = arith.constant 0 : i32
    return %c0_i32, %c0_i32_0 : i32, i32
  }
  func.func @transform_4(%arg0: i32) -> (i32, i32) {
    %c0_i32 = arith.constant 0 : i32
    %c0_i32_0 = arith.constant 0 : i32
    %c0_i32_1 = arith.constant 0 : i32
    return %c0_i32, %c0_i32_0 : i32, i32
  }
  func.func @transform_5(%arg0: i32) -> (i32, i32) {
    %c0_i32 = arith.constant 0 : i32
    %c0_i32_0 = arith.constant 0 : i32
    return %arg0, %c0_i32 : i32, i32
  }
}

</mosaic_0001>

<bundles_post_ra>
// kernel: lstm_classifier_forward.1
= control target key start
LH: loop header
LB: loop body
LE: loop exit
PB: predicated region body
PF: predicated region fallthrough
CT: control target
= control target key end

     0   :  { %10 = vsyncpa [#allocation3], 0  ;;  %s802_s0 = inlined_call_operand.vmem [shape: bf16[16,128], index: 0, kind: input, shape index: {}]   ;;  %s803_s1 = inlined_call_operand.hbm [shape: bf16[128,128], index: 1, kind: input, shape index: {}]   ;;  %s804_s2 = inlined_call_operand.vmem [shape: f32[1,128], index: 2, kind: input, shape index: {}]   ;;  %s805_s3 = inlined_call_operand.hbm [shape: bf16[128,128], index: 3, kind: input, shape index: {}]   ;;  %s806_s4 = inlined_call_operand.vmem [shape: f32[1,128], index: 4, kind: input, shape index: {}]   ;;  %s807_s5 = inlined_call_operand.vmem [shape: f32[16,128], index: 5, kind: output, shape index: {}]  }
   0x1   :  { %s18_s20 = sshll.u32 %s803_s1, 4  ;;  %s19_s20 = int_to_ptr.hbm [resolvable:$true] %s18_s20 }
   0x2   :  { %11 = vsyncpa [#allocation5], 0  ;;  %s675_s21 = smov [#allocation2]   ;;  %s33_s25 = sshll.u32 %s805_s3, 4  ;;  %s34_s25 = int_to_ptr.hbm [resolvable:$true] %s33_s25 }
   0x3   :  { %s20_s22 = sshll.u32 %s675_s21, 4  ;;  %s676_s26 = smov 64   ;;  %s21_s22 = int_to_ptr.vmem [resolvable:$true] %s20_s22 }
   0x4   :  { %s677_s27 = smov 4   ;;  %s678_s28 = smov [#allocation4]  }
   0x5   :  { %26 = dma.hbm_to_vmem [thread:$0]  %s19_s20, 1024, %s21_s22, [#allocation3], %s676_s26, %s676_s26, %s677_s27  }
   0x6   :  { %s35_s29 = sshll.u32 %s678_s28, 4  ;;  %s36_s29 = int_to_ptr.vmem [resolvable:$true] %s35_s29 }
   0x7   :  { %41 = dma.hbm_to_vmem [thread:$0]  %s34_s25, 1024, %s36_s29, [#allocation5], %s676_s26, %s676_s26, %s677_s27  }
   0x8   :  { %671 = dma.done.wait [#allocation3], 1024  }
   0x9   :  { %672 = vsyncadd [#allocation3], 4294966272 }
   0xa   :  { %673 = dma.done.wait [#allocation5], 1024  }
   0xb   :  { %674 = vsyncadd [#allocation5], 4294966272  ;;  %v585_v0 = vld [vmem:[#allocation2 + $0x38] sm:$0xff]  ;;  %v184_v1 = vlaneseq  ;;  %v584_v2 = vld [vmem:[#allocation2 + $0x30] sm:$0xff]  ;;  %v679_v15 = vmov 1.0|1.0  }
   0xc   :  { %129 = vmatpush.bf16.msra.mxu0 %v585_v0  ;;  %v583_v8 = vld [vmem:[#allocation2 + $0x28] sm:$0xff]  ;;  %v582_v14 = vld [vmem:[#allocation2 + $0x20] sm:$0xff]  ;;  %v581_v16 = vld [vmem:[#allocation2 + $0x18] sm:$0xff]  ;;  %v680_v37 = vmov 0.0|0.0  }
   0xd   :  { %v718_v3 = vshrl.u32 %v184_v1, 7  ;;  %v720_v4 = vand.u32 127, %v184_v1  ;;  %v580_v17 = vld [vmem:[#allocation2 + $0x10] sm:$0xff]  ;;  %v579_v18 = vld [vmem:[#allocation2 + $0x8] sm:$0xff]  ;;  %v578_v19 = vld [vmem:[#allocation2] sm:$0xff] }
   0xe   :  { %v577_v20 = vld [vmem:[%s802_s0] sm:$0xff] }
   0xf   :  { %v199_v5 = vadd.s32 112, %v718_v3  ;;  %v200_v6 = vadd.s32 120, %v718_v3  ;;  %v197_v7 = vadd.s32 96, %v718_v3  ;;  %v198_v9 = vadd.s32 104, %v718_v3  ;;  %v601_v38 = vld [vmem:[%s804_s2] ss:$0 sm:$0xff] }
  0x10   :  { %130 = vmatpush.bf16.msra.mxu0 %v584_v2  ;;  %vm235_vm0 = vcmp.lt.s32.totalorder %v720_v4, 32  ;;  %v195_v21 = vadd.s32 80, %v718_v3  ;;  %v196_v22 = vadd.s32 88, %v718_v3  ;;  %v193_v25 = vadd.s32 64, %v718_v3 }
  0x11   :  { %v217_v10 = vsub.s32 %v199_v5, %v720_v4  ;;  %v218_v11 = vsub.s32 %v200_v6, %v720_v4  ;;  %v215_v12 = vsub.s32 %v197_v7, %v720_v4  ;;  %v216_v13 = vsub.s32 %v198_v9, %v720_v4 }
  0x12   :  { %v213_v23 = vsub.s32 %v195_v21, %v720_v4  ;;  %v214_v24 = vsub.s32 %v196_v22, %v720_v4  ;;  %v194_v26 = vadd.s32 72, %v718_v3  ;;  %v211_v27 = vsub.s32 %v193_v25, %v720_v4  ;;  %v592_v22 = vld [vmem:[#allocation4 + $0x30] sm:$0xff] }
  0x13   :  { %vm233_vm1 = vcmp.eq.s32.totalorder %v217_v10, 32  ;;  %vm234_vm2 = vcmp.eq.s32.totalorder %v218_v11, 32  ;;  %vm231_vm4 = vcmp.eq.s32.totalorder %v215_v12, 32  ;;  %vm232_vm6 = vcmp.eq.s32.totalorder %v216_v13, 32 }
  0x14   :  { %131 = vmatpush.bf16.msra.mxu0 %v583_v8  ;;  %vm250_vm3 = vmand %vm233_vm1, %vm235_vm0  ;;  %vm229_vm11 = vcmp.eq.s32.totalorder %v213_v23, 32  ;;  %vm230_vm12 = vcmp.eq.s32.totalorder %v214_v24, 32  ;;  %v212_v28 = vsub.s32 %v194_v26, %v720_v4  ;;  %vm227_vm1 = vcmp.eq.s32.totalorder %v211_v27, 32  ;;  %v591_v27 = vld [vmem:[#allocation4 + $0x28] sm:$0xff] }
  0x15   :  { %vm251_vm5 = vmand %vm234_vm2, %vm235_vm0  ;;  %v191_v29 = vadd.s32 48, %v718_v3  ;;  %v192_v30 = vadd.s32 56, %v718_v3  ;;  %v189_v33 = vadd.s32 32, %v718_v3  ;;  %v190_v34 = vadd.s32 40, %v718_v3 }
  0x16   :  { %vm529_vm7 = vmpackc.low %vm251_vm5, %vm250_vm3  ;;  %vm228_vm2 = vcmp.eq.s32.totalorder %v212_v28, 32  ;;  %v187_v1 = vadd.s32 16, %v718_v3  ;;  %v188_v2 = vadd.s32 24, %v718_v3  ;;  %v186_v10 = vadd.s32 8, %v718_v3 }
  0x17   :  { %530 = vmatpush.bf16.msk.msra.mxu1 %vm529_vm7, %v679_v15  ;;  %vm248_vm8 = vmand %vm231_vm4, %vm235_vm0  ;;  %v209_v31 = vsub.s32 %v191_v29, %v720_v4  ;;  %v210_v32 = vsub.s32 %v192_v30, %v720_v4  ;;  %v207_v35 = vsub.s32 %v189_v33, %v720_v4  ;;  %v208_v36 = vsub.s32 %v190_v34, %v720_v4  ;;  %v589_v33 = vld [vmem:[#allocation4 + $0x18] sm:$0xff] }
  0x18   :  { %132 = vmatpush.bf16.msra.mxu0 %v582_v14  ;;  %vm249_vm9 = vmand %vm232_vm6, %vm235_vm0  ;;  %v278_v6 = vsub.s32 %v720_v4, %v187_v1  ;;  %v279_v7 = vsub.s32 %v720_v4, %v188_v2  ;;  %v276_v11 = vsub.s32 %v720_v4, %v718_v3  ;;  %v277_v14 = vsub.s32 %v720_v4, %v186_v10 }
  0x19   :  { %vm531_vm10 = vmpackc.low %vm249_vm9, %vm248_vm8  ;;  %vm225_vm6 = vcmp.eq.s32.totalorder %v209_v31, 32  ;;  %vm226_vm7 = vcmp.eq.s32.totalorder %v210_v32, 32 }
  0x1a   :  { %vm246_vm13 = vmand %vm229_vm11, %vm235_vm0  ;;  %vm223_vm11 = vcmp.eq.s32.totalorder %v207_v35, 32 }
  0x1b   :  { %532 = vmatpush.bf16.msk.msra.mxu1 %vm531_vm10, %v679_v15  ;;  %vm247_vm14 = vmand %vm230_vm12, %vm235_vm0  ;;  %vm224_vm12 = vcmp.eq.s32.totalorder %v208_v36, 32 }
  0x1c   :  { %133 = vmatpush.bf16.msra.mxu0 %v581_v16  ;;  %vm533_vm15 = vmpackc.low %vm247_vm14, %vm246_vm13 }
  0x1d   :  { %vm244_vm3 = vmand %vm227_vm1, %vm235_vm0  ;;  %vm295_vm1 = vcmp.eq.s32.totalorder %v279_v7, 64 }
  0x1e   :  { %vm245_vm4 = vmand %vm228_vm2, %vm235_vm0 }
  0x1f   :  { %534 = vmatpush.bf16.msk.msra.mxu1 %vm533_vm15, %v679_v15  ;;  %vm535_vm5 = vmpackc.low %vm245_vm4, %vm244_vm3  ;;  %vm292_vm3 = vcmp.eq.s32.totalorder %v276_v11, 64  ;;  %vm293_vm4 = vcmp.eq.s32.totalorder %v277_v14, 64 }
  0x20   :  { %134 = vmatpush.bf16.msra.mxu0 %v580_v17  ;;  %vm242_vm8 = vmand %vm225_vm6, %vm235_vm0  ;;  %v593_v17 = vld [vmem:[#allocation4 + $0x38] sm:$0xff] }
  0x21   :  { %vm243_vm9 = vmand %vm226_vm7, %vm235_vm0  ;;  %471 = vmatpush.bf16.msra.mxu3 %v593_v17 }
  0x22   :  { %vm537_vm10 = vmpackc.low %vm243_vm9, %vm242_vm8 }
  0x23   :  { %536 = vmatpush.bf16.msk.msra.mxu1 %vm535_vm5, %v679_v15  ;;  %vm240_vm13 = vmand %vm223_vm11, %vm235_vm0 }
  0x24   :  { %135 = vmatpush.bf16.msra.mxu0 %v579_v18  ;;  %vm241_vm14 = vmand %vm224_vm12, %vm235_vm0  ;;  %vm294_vm0 = vcmp.eq.s32.totalorder %v278_v6, 64 }
  0x25   :  { %vm539_vm15 = vmpackc.low %vm241_vm14, %vm240_vm13  ;;  %472 = vmatpush.bf16.msra.mxu3 %v592_v22 }
  0x26   :  { %vm541_vm2 = vmpackc.low %vm295_vm1, %vm294_vm0 }
  0x27   :  { %538 = vmatpush.bf16.msk.msra.mxu1 %vm537_vm10, %v679_v15  ;;  %542 = vmatpush.bf16.msk.msra.mxu2 %vm541_vm2, %v679_v15  ;;  %vm543_vm5 = vmpackc.low %vm293_vm4, %vm292_vm3 }
  0x28   :  { %136 = vmatpush.bf16.msra.mxu0 %v578_v19  ;;  %v681_v19 = vmov 1065369472  }
  0x29   :  { %v162_v21 = vunpack.c.l.bf16 %v681_v19  ;;  %473 = vmatpush.bf16.msra.mxu3 %v591_v27 }
  0x2b   :  { %137 = vmatmul.bf16.vlgmr.msra.gmra.mxu0 %v577_v20  ;;  %540 = vmatpush.bf16.msk.msra.mxu1 %vm539_vm15, %v679_v15  ;;  %v161_v20 = vunpack.c.h.bf16 %v681_v19 }
  0x2c   :  { %544 = vmatpush.bf16.msk.msra.mxu2 %vm543_vm5, %v679_v15  ;;  %v590_v15 = vld [vmem:[#allocation4 + $0x20] sm:$0xff] }
  0x2d   :  { %474 = vmatpush.bf16.msra.mxu3 %v590_v15 }
  0x2f   :  { %370 = vmatpush.bf16.msra.mxu1 %v680_v37 }
  0x31   :  { %475 = vmatpush.bf16.msra.mxu3 %v589_v33 }
  0x33   :  { %371 = vmatpush.bf16.msra.mxu1 %v680_v37 }
  0xa8   :  { %v138_v39 = vpop.f32.mrf.mxu0 }
  0xa9   :  { %v139_v40 = vadd.f32 %v601_v38, %v138_v39 }
  0xab   :  { %v143_v41 = vpack.c.bf16 %v139_v40, %v139_v40 }
  0xad   :  { %v179_v44 = vunpack.c.l.bf16 %v143_v41  ;;  %v145_v50 = vxor.u32 2147516416, %v143_v41 }
  0xaf   :  { %603 = vtanh.f32 %v179_v44  ;;  %v147_v52 = vunpack.c.l.bf16 %v145_v50  ;;  %v587_v44 = vld [vmem:[#allocation4 + $0x8] sm:$0xff] }
  0xb0   :  { %v140_v42 = vpop.f32.mrf.mxu0 }
  0xb1   :  { %v141_v43 = vadd.f32 %v601_v38, %v140_v42  ;;  %v149_v54 = vmul.f32 1.442695, %v147_v52 }
  0xb3   :  { %v144_v45 = vpack.c.bf16 %v141_v43, %v141_v43  ;;  %v588_v43 = vld [vmem:[#allocation4 + $0x10] sm:$0xff] }
  0xb4   :  { %476 = vmatpush.bf16.msra.mxu3 %v588_v43 }
  0xb5   :  { %v180_v46 = vunpack.c.l.bf16 %v144_v45  ;;  %v604_v47 = vpop.eup %603  ;;  %v146_v51 = vxor.u32 2147516416, %v144_v45  ;;  %v586_v45 = vld [vmem:[#allocation4] sm:$0xff] }
  0xb7   :  { %605 = vtanh.f32 %v180_v46  ;;  %v148_v53 = vunpack.c.l.bf16 %v146_v51  ;;  %v602_v51 = vld [vmem:[%s806_s4] ss:$0 sm:$0xff] }
  0xb8   :  { %607 = vpow2.f32 %v149_v54  ;;  %477 = vmatpush.bf16.msra.mxu3 %v587_v44 }
  0xb9   :  { %v151_v55 = vmul.f32 1.442695, %v148_v53 }
  0xbb   :  { %609 = vpow2.f32 %v151_v55 }
  0xbc   :  { %478 = vmatpush.bf16.msra.mxu3 %v586_v45 }
  0xbd   :  { %v606_v48 = vpop.eup %605 }
  0xbe   :  { %v183_v49 = vpack.c.bf16 %v606_v48, %v604_v47  ;;  %v608_v56 = vpop.eup %607 }
  0xbf   :  { %v153_v58 = vpack.c.bf16 %v608_v56, %v608_v56 }
  0xc0   :  { %372 = vmatmul.bf16.vlgmr.msra.gmra.mxu1 %v183_v49 }
  0xc1   :  { %v610_v57 = vpop.eup %609  ;;  %v155_v60 = vunpack.c.l.bf16 %v153_v58 }
  0xc2   :  { %v154_v59 = vpack.c.bf16 %v610_v57, %v610_v57 }
  0xc3   :  { %v157_v62 = vadd.f32 1.0, %v155_v60 }
  0xc4   :  { %v156_v61 = vunpack.c.l.bf16 %v154_v59 }
  0xc5   :  { %v159_v0 = vpack.c.bf16 %v157_v62, %v157_v62 }
  0xc6   :  { %v158_v63 = vadd.f32 1.0, %v156_v61 }
  0xc7   :  { %v163_v8 = vunpack.c.h.bf16 %v159_v0  ;;  %v164_v9 = vunpack.c.l.bf16 %v159_v0 }
  0xc8   :  { %v160_v5 = vpack.c.bf16 %v158_v63, %v158_v63 }
  0xc9   :  { %611 = vrcp.f32 %v163_v8 }
  0xca   :  { %v170_v12 = vunpack.c.h.bf16 %v160_v5  ;;  %v171_v13 = vunpack.c.l.bf16 %v160_v5  ;;  %613 = vrcp.f32 %v164_v9 }
  0xcc   :  { %615 = vrcp.f32 %v170_v12 }
  0xcd   :  { %617 = vrcp.f32 %v171_v13 }
  0xcf   :  { %v612_v16 = vpop.eup %611 }
  0xd0   :  { %v614_v18 = vpop.eup %613  ;;  %v166_v4 = vmul.f32 %v612_v16, %v161_v20 }
  0xd1   :  { %v168_v24 = vmul.f32 %v614_v18, %v162_v21 }
  0xd2   :  { %v616_v3 = vpop.eup %615 }
  0xd3   :  { %v618_v23 = vpop.eup %617  ;;  %v173_v25 = vmul.f32 %v616_v3, %v161_v20  ;;  %v169_v29 = vpack.c.bf16 %v166_v4, %v168_v24 }
  0xd4   :  { %v175_v26 = vmul.f32 %v618_v23, %v162_v21 }
  0xd5   :  { %v177_v31 = vunpack.c.l.bf16 %v169_v29 }
  0xd6   :  { %v176_v30 = vpack.c.bf16 %v173_v25, %v175_v26 }
  0xd8   :  { %v178_v32 = vunpack.c.l.bf16 %v176_v30 }
 0x13d   :  { %v373_v28 = vpop.f32.mrf.mxu1 }
 0x13e   :  { %v378_v35 = vmul.f32 %v373_v28, %v177_v31 }
 0x145   :  { %v375_v34 = vpop.f32.mrf.mxu1 }
 0x146   :  { %v379_v36 = vmul.f32 %v375_v34, %v178_v32 }
 0x148   :  { %v380_v37 = vpack.c.bf16 %v379_v36, %v378_v35 }
 0x14a   :  { %v381_v38 = vunpack.c.l.bf16 %v380_v37  ;;  %v382_v39 = vunpack.c.h.bf16 %v380_v37 }
 0x14c   :  { %619 = vtanh.f32 %v381_v38 }
 0x14d   :  { %621 = vtanh.f32 %v382_v39 }
 0x152   :  { %v620_v40 = vpop.eup %619 }
 0x153   :  { %v622_v41 = vpop.eup %621 }
 0x154   :  { %v385_v42 = vpack.c.bf16 %v622_v41, %v620_v40 }
 0x156   :  { %394 = vmatmul.bf16.vlgmr.msra.gmra.mxu2 %v385_v42 }
 0x1d9   :  { %v395_v46 = vpop.f32.mrf.mxu2 }
 0x1da   :  { %v400_v48 = vmul.f32 %v395_v46, %v177_v31 }
 0x1e1   :  { %v397_v47 = vpop.f32.mrf.mxu2 }
 0x1e2   :  { %v401_v49 = vmul.f32 %v397_v47, %v178_v32 }
 0x1e4   :  { %v402_v50 = vpack.c.bf16 %v401_v49, %v400_v48 }
 0x1e6   :  { %479 = vmatmul.bf16.vlgmr.msra.gmra.mxu3 %v402_v50 }
 0x269   :  { %v480_v52 = vpop.f32.mrf.mxu3 }
 0x26a   :  { %v481_v53 = vadd.f32 %v602_v51, %v480_v52 }
 0x26c   :  { %485 = vst [vmem:[%s807_s5] sm:$0xff] %v481_v53 }
 0x271   :  { %v482_v54 = vpop.f32.mrf.mxu3 }
 0x272   :  { %v483_v55 = vadd.f32 %v602_v51, %v482_v54 }
 0x274   :  { %486 = vst [vmem:[%s807_s5 + $0x8] sm:$0xff] %v483_v55 }
 0x275   :  { %491 = vsyncpa [#allocation3], 1 }
 0x276   :  { %492 = vsyncpa [#allocation5], 1 }

</bundles_post_ra>
